<compile_context>
chip_gen: v7x
topology: tpu7x:2x2x1
jax: 0.10.0
libtpu: 0.0.40
codegen_flags: <defaults>
</compile_context>

<pallas_src>
import functools

import jax
import jax.numpy as jnp
from jax.experimental import pallas as pl
from jax.experimental.pallas import tpu as pltpu

_LANE = 128


def _contextnet_gather_kernel(ids_ref, mask_ref, table_ref, o_ref):
    # ids_ref:   (tn, 1)   int32 class indices
    # mask_ref:  (tn, 1)   float32 multiplier (all-ones when mask is None)
    # table_ref: (C, Lp)   float32 composed LUT, lane-padded to multiple of 128
    # o_ref:     (tn, Lp)  float32 lane-dense output slab
    ids = ids_ref[...]                                   # (tn, 1)
    mask = mask_ref[...]                                 # (tn, 1)
    table = table_ref[...]                               # (C, Lp)
    num_classes = table.shape[0]

    acc = jnp.zeros((ids.shape[0], table.shape[1]), jnp.float32)
    # C is tiny (6): a VPU compare/select chain beats a K=6 one-hot MXU matmul.
    for c in range(num_classes):
        row = table[c:c + 1, :]                          # (1, Lp) static slice
        acc = jnp.where(ids == c, row, acc)              # broadcast over lanes
    # NOTE: out-of-range ids fall through to zeros (PyTorch nn.Embedding would
    # raise); acceptable for inputs guaranteed in [0, C).
    o_ref[...] = (acc * mask).astype(o_ref.dtype)


@functools.partial(jax.jit, static_argnames=("max_rows_per_block",))
def contextnet_forward(x, mask, emb, w1, b1, w2, b2, *, max_rows_per_block=1024):
    """x: (B, S) int32 class ids, mask: (B, S) float or None.

    Returns (B, S, context_dim) float32, matching the PyTorch forward.
    """
    B, S = x.shape
    N = B * S
    C, H = emb.shape
    Ctx = w2.shape[1]
    lane_pad = -(-Ctx // _LANE) * _LANE                  # Ctx rounded up to 128

    # Collapse the whole network into a per-class table (exact, trivially cheap:
    # (C, H) activations with C = num_classes).
    z = jnp.maximum(emb, 0.0)                            # nn.ReLU
    z = z @ w1 + b1.reshape(1, -1)                       # nn.Linear(H, H)
    z = jnp.maximum(z, 0.0)                              # nn.ReLU
    table = z @ w2 + b2.reshape(1, -1)                   # nn.Linear(H, Ctx)
    table = jnp.pad(table, ((0, 0), (0, lane_pad - Ctx)))  # (C, lane_pad)

    ids = x.reshape(N, 1).astype(jnp.int32)
    if mask is None:
        mask_flat = jnp.ones((N, 1), jnp.float32)
    else:
        mask_flat = mask.reshape(N, 1).astype(jnp.float32)

    # One big block when N is small; otherwise large (multiple-of-8) row tiles.
    tn = N if N <= max_rows_per_block else max_rows_per_block
    grid = (pl.cdiv(N, tn),)

    out_padded = pl.pallas_call(
        _contextnet_gather_kernel,
        out_shape=jax.ShapeDtypeStruct((N, lane_pad), jnp.float32),
        grid_spec=pltpu.PrefetchScalarGridSpec(
            num_scalar_prefetch=0,
            grid=grid,
            in_specs=[
                pl.BlockSpec((tn, 1), lambda i: (i, 0)),          # ids
                pl.BlockSpec((tn, 1), lambda i: (i, 0)),          # mask
                pl.BlockSpec((C, lane_pad), lambda i: (0, 0)),    # composed LUT
            ],
            out_specs=pl.BlockSpec((tn, lane_pad), lambda i: (i, 0)),
        ),
        compiler_params=pltpu.CompilerParams(
            dimension_semantics=("parallel",)),
    )(ids, mask_flat, table)

    return out_padded[:, :Ctx].reshape(B, S, Ctx)


def init_params(key, hidden_dim=64, context_dim=16, num_classes=6):
    """Deterministic synthetic parameters matching ContextNet.__init__ shapes."""
    k_emb, k_w1, k_b1, k_w2, k_b2 = jax.random.split(key, 5)
    emb = jax.random.normal(k_emb, (num_classes, hidden_dim), jnp.float32)
    # PyTorch nn.Linear stores weight as (out, in); we keep the transposed
    # (in, out) layout so the composed table is a plain chain of matmuls.
    w1 = jax.random.normal(k_w1, (hidden_dim, hidden_dim), jnp.float32) * 0.1
    b1 = jax.random.normal(k_b1, (1, hidden_dim), jnp.float32) * 0.1
    w2 = jax.random.normal(k_w2, (hidden_dim, context_dim), jnp.float32) * 0.1
    b2 = jax.random.normal(k_b2, (1, context_dim), jnp.float32) * 0.1
    return emb, w1, b1, w2, b2


def reference_forward(x, mask, emb, w1, b1, w2, b2):
    """Pure-JAX reference mirroring the PyTorch forward."""
    z = emb[x]                      # embedding lookup
    z = jnp.maximum(z, 0.0)
    z = z @ w1 + b1[0]
    z = jnp.maximum(z, 0.0)
    z = z @ w2 + b2[0]
    if mask is not None:
        z = z * mask[..., None]
    return z


if __name__ == "__main__":
    hidden_dim, context_dim, num_classes = 64, 16, 6
    B, S = 2, 8

    key = jax.random.PRNGKey(0)
    k_params, k_x, k_mask = jax.random.split(key, 3)

    emb, w1, b1, w2, b2 = init_params(
        k_params, hidden_dim, context_dim, num_classes)

    x = jax.random.randint(k_x, (B, S), 0, num_classes, dtype=jnp.int32)
    mask = (jax.random.uniform(k_mask, (B, S)) > 0.3).astype(jnp.float32)

    out = contextnet_forward(x, mask, emb, w1, b1, w2, b2)
    out = jax.block_until_ready(out)

    ref = reference_forward(x, mask, emb, w1, b1, w2, b2)
    assert out.shape == (B, S, context_dim)
    assert jnp.allclose(out, ref, atol=1e-4, rtol=1e-4), "mismatch vs reference"

    print("KERNEL_OK")
</pallas_src>

<mosaic_0001>
module attributes {stable_mosaic.version = 11 : i64} {
  func.func @_contextnet_gather_kernel(%arg0: i32, %arg1: memref<16x1xi32, #tpu.memory_space<vmem>>, %arg2: memref<16x1xf32, #tpu.memory_space<vmem>>, %arg3: memref<6x128xf32, #tpu.memory_space<vmem>>, %arg4: memref<16x128xf32, #tpu.memory_space<vmem>>) attributes {dimension_semantics = [#tpu.dimension_semantics<parallel>], iteration_bounds = array<i64: 1>, scalar_prefetch = 0 : i64, scratch_operands = 0 : i64, tpu.core_type = #tpu.core_type<tc>, window_params = [{transform_indices = @transform_0, window_bounds = array<i64: 16, 1>}, {transform_indices = @transform_1, window_bounds = array<i64: 16, 1>}, {pipeline_mode = #tpu.pipeline_mode<synchronous>, transform_indices = @transform_2, window_bounds = array<i64: 6, 128>}, {transform_indices = @transform_3, window_bounds = array<i64: 16, 128>}]} {
    %c0 = arith.constant 0 : index
    %c0_0 = arith.constant 0 : index
    %0 = vector.load %arg1[%c0, %c0_0] : memref<16x1xi32, #tpu.memory_space<vmem>>, vector<16x1xi32>
    %c0_1 = arith.constant 0 : index
    %c0_2 = arith.constant 0 : index
    %1 = vector.load %arg2[%c0_1, %c0_2] : memref<16x1xf32, #tpu.memory_space<vmem>>, vector<16x1xf32>
    %c0_3 = arith.constant 0 : index
    %c0_4 = arith.constant 0 : index
    %2 = vector.load %arg3[%c0_3, %c0_4] : memref<6x128xf32, #tpu.memory_space<vmem>>, vector<6x128xf32>
    %cst = arith.constant 0.000000e+00 : f32
    %3 = vector.broadcast %cst : f32 to vector<16x128xf32>
    %4 = vector.extract_strided_slice %2 {offsets = [0, 0], sizes = [1, 128], strides = [1, 1]} : vector<6x128xf32> to vector<1x128xf32>
    %c0_i32 = arith.constant 0 : i32
    %5 = vector.broadcast %c0_i32 : i32 to vector<16x1xi32>
    %6 = arith.cmpi eq, %0, %5 : vector<16x1xi32>
    %7 = vector.shape_cast %6 : vector<16x1xi1> to vector<16x1xi1>
    %8 = vector.broadcast %7 : vector<16x1xi1> to vector<16x128xi1>
    %9 = vector.shape_cast %4 : vector<1x128xf32> to vector<1x128xf32>
    %10 = vector.broadcast %9 : vector<1x128xf32> to vector<16x128xf32>
    %11 = arith.select %8, %10, %3 : vector<16x128xi1>, vector<16x128xf32>
    %12 = vector.extract_strided_slice %2 {offsets = [1, 0], sizes = [1, 128], strides = [1, 1]} : vector<6x128xf32> to vector<1x128xf32>
    %c1_i32 = arith.constant 1 : i32
    %13 = vector.broadcast %c1_i32 : i32 to vector<16x1xi32>
    %14 = arith.cmpi eq, %0, %13 : vector<16x1xi32>
    %15 = vector.shape_cast %14 : vector<16x1xi1> to vector<16x1xi1>
    %16 = vector.broadcast %15 : vector<16x1xi1> to vector<16x128xi1>
    %17 = vector.shape_cast %12 : vector<1x128xf32> to vector<1x128xf32>
    %18 = vector.broadcast %17 : vector<1x128xf32> to vector<16x128xf32>
    %19 = arith.select %16, %18, %11 : vector<16x128xi1>, vector<16x128xf32>
    %20 = vector.extract_strided_slice %2 {offsets = [2, 0], sizes = [1, 128], strides = [1, 1]} : vector<6x128xf32> to vector<1x128xf32>
    %c2_i32 = arith.constant 2 : i32
    %21 = vector.broadcast %c2_i32 : i32 to vector<16x1xi32>
    %22 = arith.cmpi eq, %0, %21 : vector<16x1xi32>
    %23 = vector.shape_cast %22 : vector<16x1xi1> to vector<16x1xi1>
    %24 = vector.broadcast %23 : vector<16x1xi1> to vector<16x128xi1>
    %25 = vector.shape_cast %20 : vector<1x128xf32> to vector<1x128xf32>
    %26 = vector.broadcast %25 : vector<1x128xf32> to vector<16x128xf32>
    %27 = arith.select %24, %26, %19 : vector<16x128xi1>, vector<16x128xf32>
    %28 = vector.extract_strided_slice %2 {offsets = [3, 0], sizes = [1, 128], strides = [1, 1]} : vector<6x128xf32> to vector<1x128xf32>
    %c3_i32 = arith.constant 3 : i32
    %29 = vector.broadcast %c3_i32 : i32 to vector<16x1xi32>
    %30 = arith.cmpi eq, %0, %29 : vector<16x1xi32>
    %31 = vector.shape_cast %30 : vector<16x1xi1> to vector<16x1xi1>
    %32 = vector.broadcast %31 : vector<16x1xi1> to vector<16x128xi1>
    %33 = vector.shape_cast %28 : vector<1x128xf32> to vector<1x128xf32>
    %34 = vector.broadcast %33 : vector<1x128xf32> to vector<16x128xf32>
    %35 = arith.select %32, %34, %27 : vector<16x128xi1>, vector<16x128xf32>
    %36 = vector.extract_strided_slice %2 {offsets = [4, 0], sizes = [1, 128], strides = [1, 1]} : vector<6x128xf32> to vector<1x128xf32>
    %c4_i32 = arith.constant 4 : i32
    %37 = vector.broadcast %c4_i32 : i32 to vector<16x1xi32>
    %38 = arith.cmpi eq, %0, %37 : vector<16x1xi32>
    %39 = vector.shape_cast %38 : vector<16x1xi1> to vector<16x1xi1>
    %40 = vector.broadcast %39 : vector<16x1xi1> to vector<16x128xi1>
    %41 = vector.shape_cast %36 : vector<1x128xf32> to vector<1x128xf32>
    %42 = vector.broadcast %41 : vector<1x128xf32> to vector<16x128xf32>
    %43 = arith.select %40, %42, %35 : vector<16x128xi1>, vector<16x128xf32>
    %44 = vector.extract_strided_slice %2 {offsets = [5, 0], sizes = [1, 128], strides = [1, 1]} : vector<6x128xf32> to vector<1x128xf32>
    %c5_i32 = arith.constant 5 : i32
    %45 = vector.broadcast %c5_i32 : i32 to vector<16x1xi32>
    %46 = arith.cmpi eq, %0, %45 : vector<16x1xi32>
    %47 = vector.shape_cast %46 : vector<16x1xi1> to vector<16x1xi1>
    %48 = vector.broadcast %47 : vector<16x1xi1> to vector<16x128xi1>
    %49 = vector.shape_cast %44 : vector<1x128xf32> to vector<1x128xf32>
    %50 = vector.broadcast %49 : vector<1x128xf32> to vector<16x128xf32>
    %51 = arith.select %48, %50, %43 : vector<16x128xi1>, vector<16x128xf32>
    %52 = vector.broadcast %1 : vector<16x1xf32> to vector<16x128xf32>
    %53 = arith.mulf %51, %52 : vector<16x128xf32>
    %c0_5 = arith.constant 0 : index
    %c0_6 = arith.constant 0 : index
    %54 = vector.load %arg4[%c0_5, %c0_6] : memref<16x128xf32, #tpu.memory_space<vmem>>, vector<16x128xf32>
    tpu.vector_store %arg4[%c0_5, %c0_6], %53 {strides = array<i32>} : memref<16x128xf32, #tpu.memory_space<vmem>>, vector<16x128xf32>,
    return
  }
  func.func @transform_0(%arg0: i32) -> (i32, i32) {
    %c0_i32 = arith.constant 0 : i32
    %c0_i32_0 = arith.constant 0 : i32
    return %arg0, %c0_i32 : i32, i32
  }
  func.func @transform_1(%arg0: i32) -> (i32, i32) {
    %c0_i32 = arith.constant 0 : i32
    %c0_i32_0 = arith.constant 0 : i32
    return %arg0, %c0_i32 : i32, i32
  }
  func.func @transform_2(%arg0: i32) -> (i32, i32) {
    %c0_i32 = arith.constant 0 : i32
    %c0_i32_0 = arith.constant 0 : i32
    %c0_i32_1 = arith.constant 0 : i32
    return %c0_i32, %c0_i32_0 : i32, i32
  }
  func.func @transform_3(%arg0: i32) -> (i32, i32) {
    %c0_i32 = arith.constant 0 : i32
    %c0_i32_0 = arith.constant 0 : i32
    return %arg0, %c0_i32 : i32, i32
  }
}

</mosaic_0001>

<bundles_post_ra>
// kernel: contextnet_forward.1
= control target key start
LH: loop header
LB: loop body
LE: loop exit
PB: predicated region body
PF: predicated region fallthrough
CT: control target
= control target key end

     0   :  { %v148_v0 = vmov 0   ;;  %v31_v19 = vlaneseq  ;;  %s190_s0 = inlined_call_operand.vmem [shape: s32[16,1], index: 0, kind: input, shape index: {}]   ;;  %s191_s1 = inlined_call_operand.vmem [shape: f32[16,1], index: 1, kind: input, shape index: {}]   ;;  %s192_s2 = inlined_call_operand.vmem [shape: f32[6,128], index: 2, kind: input, shape index: {}]   ;;  %s193_s3 = inlined_call_operand.vmem [shape: f32[16,128], index: 3, kind: output, shape index: {}]  }
   0x1   :  { %147 = vset.pattern.permute.xlu1 %v148_v0  ;;  %146 = vset.pattern.permute.xlu0 %v148_v0  ;;  %v14_v1 = vld [vmem:[%s190_s0] sm:$0xff]  ;;  %v15_v2 = vld [vmem:[%s190_s0 + $0x8] sm:$0xff] }
   0x2   :  { %vm37_vm0 = vcmp.eq.s32.totalorder %v14_v1, 1  ;;  %vm19_vm1 = vcmp.eq.s32.totalorder %v14_v1, 0  ;;  %vm38_vm2 = vcmp.eq.s32.totalorder %v15_v2, 1  ;;  %vm20_vm3 = vcmp.eq.s32.totalorder %v15_v2, 0  ;;  %v17_v15 = vld [vmem:[%s191_s1 + $0x8] sm:$0xff]  ;;  %v16_v16 = vld [vmem:[%s191_s1] sm:$0xff] }
   0x3   :  { %v39_v3 = vsel %vm37_vm0, 1, %v148_v0  ;;  %v21_v4 = vsel %vm19_vm1, 1, %v148_v0  ;;  %v40_v5 = vsel %vm38_vm2, 1, %v148_v0  ;;  %v22_v6 = vsel %vm20_vm3, 1, %v148_v0  ;;  %v18_v26 = vld [vmem:[%s192_s2] sm:$0x3f] }
   0x4   :  { %42 = vperm.xlu1 %147, %v39_v3   ;;  %24 = vperm.xlu0 %146, %v21_v4   ;;  %vm56_vm4 = vcmp.eq.s32.totalorder %v15_v2, 2  ;;  %vm55_vm5 = vcmp.eq.s32.totalorder %v14_v1, 2  ;;  %vm74_vm6 = vcmp.eq.s32.totalorder %v15_v2, 3  ;;  %vm73_vm7 = vcmp.eq.s32.totalorder %v14_v1, 3 }
   0x5   :  { %v58_v7 = vsel %vm56_vm4, 1, %v148_v0  ;;  %v57_v8 = vsel %vm55_vm5, 1, %v148_v0  ;;  %v76_v9 = vsel %vm74_vm6, 1, %v148_v0  ;;  %v75_v10 = vsel %vm73_vm7, 1, %v148_v0 }
   0x6   :  { %vm92_vm8 = vcmp.eq.s32.totalorder %v15_v2, 4  ;;  %vm91_vm9 = vcmp.eq.s32.totalorder %v14_v1, 4  ;;  %vm110_vm10 = vcmp.eq.s32.totalorder %v15_v2, 5  ;;  %vm109_vm11 = vcmp.eq.s32.totalorder %v14_v1, 5 }
   0x7   :  { %v94_v11 = vsel %vm92_vm8, 1, %v148_v0  ;;  %v93_v12 = vsel %vm91_vm9, 1, %v148_v0  ;;  %v112_v13 = vsel %vm110_vm10, 1, %v148_v0  ;;  %v111_v14 = vsel %vm109_vm11, 1, %v148_v0 }
   0x8   :  { %45 = vperm.xlu1 %147, %v40_v5   ;;  %27 = vperm.xlu0 %146, %v22_v6   ;;  %v32_v22 = vshrl.u32 %v31_v19, 7 }
   0xa   :  { %v33_v25 = vsub.s32 0, %v32_v22  ;;  %v51_v27 = vsub.s32 1, %v32_v22  ;;  %v69_v28 = vsub.s32 2, %v32_v22  ;;  %v87_v32 = vsub.s32 3, %v32_v22 }
   0xb   :  { %v105_v33 = vsub.s32 4, %v32_v22  ;;  %v123_v34 = vsub.s32 5, %v32_v22 }
   0xc   :  { %63 = vperm.xlu1 %147, %v58_v7   ;;  %60 = vperm.xlu0 %146, %v57_v8   ;;  %v34_v31 = vrot.slane %v18_v26, %v33_v25  ;;  %v52_v35 = vrot.slane %v18_v26, %v51_v27  ;;  %v70_v36 = vrot.slane %v18_v26, %v69_v28 }
   0xd   :  { %v88_v41 = vrot.slane %v18_v26, %v87_v32  ;;  %v106_v42 = vrot.slane %v18_v26, %v105_v33  ;;  %v124_v43 = vrot.slane %v18_v26, %v123_v34 }
  0x10   :  { %81 = vperm.xlu1 %147, %v76_v9   ;;  %78 = vperm.xlu0 %146, %v75_v10  }
  0x14   :  { %99 = vperm.xlu1 %147, %v94_v11   ;;  %96 = vperm.xlu0 %146, %v93_v12  }
  0x18   :  { %117 = vperm.xlu1 %147, %v112_v13   ;;  %114 = vperm.xlu0 %146, %v111_v14  }
  0x1c   :  { %134 = vperm.xlu1 %147, %v17_v15   ;;  %129 = vperm.xlu0 %146, %v16_v16  }
  0x83   :  { %v43_v17 = vpop.permute.xlu1 %42  ;;  %v25_v18 = vpop.permute.xlu0 %24 }
  0x84   :  { %vm29_vm12 = vcmp.eq.s32.totalorder %v25_v18, 1  ;;  %vm47_vm14 = vcmp.eq.s32.totalorder %v43_v17, 1 }
  0x85   :  { %v35_v39 = vsel %vm29_vm12, %v34_v31, 0.0 }
  0x86   :  { %v53_v44 = vsel %vm47_vm14, %v52_v35, %v35_v39 }
  0x87   :  { %v46_v20 = vpop.permute.xlu1 %45  ;;  %v28_v21 = vpop.permute.xlu0 %27 }
  0x88   :  { %vm30_vm13 = vcmp.eq.s32.totalorder %v28_v21, 1  ;;  %vm48_vm15 = vcmp.eq.s32.totalorder %v46_v20, 1 }
  0x89   :  { %v36_v40 = vsel %vm30_vm13, %v34_v31, 0.0 }
  0x8a   :  { %v54_v45 = vsel %vm48_vm15, %v52_v35, %v36_v40 }
  0x8b   :  { %v64_v23 = vpop.permute.xlu1 %63  ;;  %v61_v24 = vpop.permute.xlu0 %60 }
  0x8c   :  { %vm66_vm0 = vcmp.eq.s32.totalorder %v64_v23, 1  ;;  %vm65_vm1 = vcmp.eq.s32.totalorder %v61_v24, 1 }
  0x8d   :  { %v72_v48 = vsel %vm66_vm0, %v70_v36, %v54_v45  ;;  %v71_v49 = vsel %vm65_vm1, %v70_v36, %v53_v44 }
  0x8f   :  { %v82_v29 = vpop.permute.xlu1 %81  ;;  %v79_v30 = vpop.permute.xlu0 %78 }
  0x90   :  { %vm84_vm2 = vcmp.eq.s32.totalorder %v82_v29, 1  ;;  %vm83_vm3 = vcmp.eq.s32.totalorder %v79_v30, 1 }
  0x91   :  { %v90_v50 = vsel %vm84_vm2, %v88_v41, %v72_v48  ;;  %v89_v51 = vsel %vm83_vm3, %v88_v41, %v71_v49 }
  0x93   :  { %v100_v37 = vpop.permute.xlu1 %99  ;;  %v97_v38 = vpop.permute.xlu0 %96 }
  0x94   :  { %vm102_vm4 = vcmp.eq.s32.totalorder %v100_v37, 1  ;;  %vm101_vm5 = vcmp.eq.s32.totalorder %v97_v38, 1 }
  0x95   :  { %v108_v52 = vsel %vm102_vm4, %v106_v42, %v90_v50  ;;  %v107_v53 = vsel %vm101_vm5, %v106_v42, %v89_v51 }
  0x97   :  { %v118_v46 = vpop.permute.xlu1 %117  ;;  %v115_v47 = vpop.permute.xlu0 %114 }
  0x98   :  { %vm120_vm6 = vcmp.eq.s32.totalorder %v118_v46, 1  ;;  %vm119_vm7 = vcmp.eq.s32.totalorder %v115_v47, 1 }
  0x99   :  { %v126_v55 = vsel %vm120_vm6, %v124_v43, %v108_v52  ;;  %v125_v56 = vsel %vm119_vm7, %v124_v43, %v107_v53 }
  0x9b   :  { %v135_v54 = vpop.permute.xlu1 %134  ;;  %v130_v57 = vpop.permute.xlu0 %129 }
  0x9c   :  { %v138_v58 = vmul.f32 %v135_v54, %v126_v55  ;;  %v137_v59 = vmul.f32 %v130_v57, %v125_v56 }
  0x9e   :  { %140 = vst [vmem:[%s193_s3 + $0x8] sm:$0xff] %v138_v58  ;;  %139 = vst [vmem:[%s193_s3] sm:$0xff] %v137_v59 }

</bundles_post_ra>
